<compile_context>
chip_gen: v5e
topology: v5e:2x2
jax: 0.10.0
libtpu: 0.0.40
codegen_flags: <defaults>
</compile_context>

<pallas_src>
import functools
import math

import jax
import jax.numpy as jnp
from jax.experimental import pallas as pl
from jax.experimental.pallas import tpu as pltpu

LOG2PI = math.log(2.0 * math.pi)
VMEM_LIMIT = 32 * 1024 * 1024       # 25% of v5e/v6e VMEM, == v7x scoped default
OUT_LANES = 128                     # lane-dense ZIF output slab width


def _round_up(x, m):
    return (x + m - 1) // m * m


def _pick_tile(total, candidates=(512, 256, 128)):
    """Largest lane tile in `candidates` dividing `total` (total is a 128-multiple)."""
    for c in candidates:
        if total % c == 0:
            return c
    return total


# --------------------------- kernel 1: encoder (forward) ---------------------------
def _encoder_kernel(Dp, tn, x_ref, w_ref, b_ref, out_ref):
    # All grid queries hoisted to the top level of the body (never inside pl.when).
    k = pl.program_id(2)
    nk = pl.num_programs(2)
    is_mu = (pl.program_id(1) * tn) < Dp          # tiles never straddle the mu/q split

    @pl.when(k == 0)
    def _init():
        out_ref[...] = jnp.zeros_like(out_ref)

    # bf16 x bf16 -> f32 accumulation on the MXU, directly into the f32 output block
    # (its block index is constant across k, so it stays VMEM-resident).
    out_ref[...] += jnp.dot(x_ref[...], w_ref[...], preferred_element_type=jnp.float32)

    @pl.when(k == nk - 1)
    def _finalize():
        z = out_ref[...] + b_ref[...]
        # ELU(z) + 1 + eps (mu head); clipped sigmoid (q head).  Both branches are
        # cheap relative to the MXU work and selecting with a scalar `where` avoids
        # nested control flow.
        mu_act = jnp.where(z > 0, z + 1.0, jnp.exp(jnp.minimum(z, 0.0))) + 1e-6
        q_act = jnp.clip(jax.nn.sigmoid(z), 1e-6, 1.0 - 1e-6)
        out_ref[...] = jnp.where(is_mu, mu_act, q_act)


def pack_encoder_params(params):
    """One-time fusion/padding of the encoder weights (kept resident across calls)."""
    w_mu = jnp.asarray(params["w_mu"], jnp.float32)
    w_q = jnp.asarray(params["w_q"], jnp.float32)
    d_in, d_out = w_mu.shape
    Din = _round_up(d_in, 128)
    Dp = _round_up(d_out, 128)
    w = jnp.zeros((Din, 2 * Dp), jnp.float32)
    w = w.at[:d_in, :d_out].set(w_mu)
    w = w.at[:d_in, Dp:Dp + d_out].set(w_q)
    b = jnp.zeros((1, 2 * Dp), jnp.float32)
    b = b.at[:, :d_out].set(jnp.asarray(params["b_mu"], jnp.float32).reshape(1, -1))
    b = b.at[:, Dp:Dp + d_out].set(jnp.asarray(params["b_q"], jnp.float32).reshape(1, -1))
    return dict(w=w.astype(jnp.bfloat16), b=b, d_in=d_in, d_out=d_out, Din=Din, Dp=Dp)


def _encoder_padded(x_nchw, enc):
    """Runs the fused-head GEMM; returns the padded (Bp, 2*Dp) f32 slab."""
    B = x_nchw.shape[0]
    x = x_nchw.reshape(B, -1).astype(jnp.float32)          # NCHW -> (B, C*H*W)
    d_in, Din, Dp = enc["d_in"], enc["Din"], enc["Dp"]

    tn = _pick_tile(Dp)                                    # divides Dp -> no head straddle
    tk = _pick_tile(Din)
    tb = min(_round_up(B, 8), 256)
    Bp = _round_up(B, tb)
    xp = jnp.zeros((Bp, Din), jnp.float32).at[:B, :d_in].set(x).astype(jnp.bfloat16)

    kern = functools.partial(_encoder_kernel, Dp, tn)
    out = pl.pallas_call(
        kern,
        grid=(Bp // tb, (2 * Dp) // tn, Din // tk),
        in_specs=[
            pl.BlockSpec((tb, tk), lambda i, j, k: (i, k)),
            pl.BlockSpec((tk, tn), lambda i, j, k: (k, j)),
            pl.BlockSpec((1, tn), lambda i, j, k: (0, j)),
        ],
        out_specs=pl.BlockSpec((tb, tn), lambda i, j, k: (i, j)),
        out_shape=jax.ShapeDtypeStruct((Bp, 2 * Dp), jnp.float32),
        compiler_params=pltpu.CompilerParams(
            dimension_semantics=("parallel", "parallel", "arbitrary"),
            vmem_limit_bytes=VMEM_LIMIT),
    )(xp, enc["w"], enc["b"])
    return out, B, Bp


def encoder_forward(x_nchw, params, enc=None):
    """ZeroInflatedFlowFA.forward(): returns (mu, q), each (B, d_out) f32."""
    enc = pack_encoder_params(params) if enc is None else enc
    out, B, _ = _encoder_padded(x_nchw, enc)
    d_out, Dp = enc["d_out"], enc["Dp"]
    return out[:B, :d_out], out[:B, Dp:Dp + d_out]


# --------------------- kernel 2: ZIF log-likelihood hot path ------------------------
def _zif_kernel(rho, log_rho,
                t_ref, mu_ref, q_ref, row_ref, rp_ref, ru_ref, rg_ref, out_ref):
    j = pl.program_id(1)                                  # hoisted (outside pl.when)

    # output is a VMEM-resident lane-dense accumulator across the D reduction axis
    @pl.when(j == 0)
    def _init():
        out_ref[...] = jnp.zeros_like(out_ref)

    y = t_ref[...]                                        # (tb, td)
    mu = mu_ref[...]
    q = jnp.clip(q_ref[...], 1e-6, 1.0 - 1e-6)            # defensive clip

    # per-neuron row constants, pre-packed once in the wrapper into one (8, Dp) block
    a2 = row_ref[0:1, :]                                  # (1, td)
    t2 = row_ref[1:2, :]
    log_abs_a2 = row_ref[2:3, :]
    inv_psin = row_ref[3:4, :]                            # sigma_diag / psi
    row_c = row_ref[4:5, :]                               # -0.5*(log(2*pi) + log psi_n)

    mb = y >= rho                                         # gaussian mask
    m = mb.astype(jnp.float32)

    # flow 'learned-mini': Affine(t=-rho, fixed) -> Log -> Affine(a2, t2) -> Exp
    x1 = jnp.maximum(jnp.where(mb, y - rho, 1.0), 1e-12)  # y == rho would hit log(0)
    lx1 = jnp.log(x1)                                     # EUP
    x3 = a2 * lx1 + t2
    transformed = jnp.exp(x3)                             # EUP
    logdet = x3 - lx1 + log_abs_a2                        # per-element log|dT(y)/dy|

    # single transcendental for both branches: log(q) on gaussian, log(1-q) on uniform
    l_sel = jnp.log(jnp.where(mb, q, 1.0 - q))            # EUP

    delta = transformed - mu
    w = m * inv_psin                                      # masked diag(psi_n)^-1
    wd = w * delta

    term = l_sel + jnp.where(mb, logdet + row_c, -log_rho) - 0.5 * wd * delta

    # Three reductions over the neuron axis as lane-dense f32 MXU matmuls; the R
    # matrices carry the lane placement AND the d_out validity mask (zero rows),
    # so a single unmasked full-block accumulate suffices.
    contrib = (jnp.dot(term, rp_ref[...], preferred_element_type=jnp.float32)
               + jnp.dot(wd, ru_ref[...], preferred_element_type=jnp.float32)
               + jnp.dot(w, rg_ref[...], preferred_element_type=jnp.float32))
    out_ref[...] += contrib


def pack_zif_params(params, zero_threshold):
    """One-time hoist of all per-neuron (row-only) math out of the ZIF kernel."""
    C = jnp.asarray(params["C"], jnp.float32)
    K, d_out = C.shape
    logpsi = jnp.asarray(params["logpsi"], jnp.float32).reshape(-1)
    a2 = jnp.asarray(params["a2"], jnp.float32).reshape(-1)
    t2 = jnp.asarray(params["t2"], jnp.float32).reshape(-1)
    Dp = _round_up(d_out, 128)

    # TODO(synk): lane-packed output layout assumes 1 + K + K*K <= 128 (d_latent <= 10);
    #             larger d_latent needs a wider output slab.
    assert 1 + K + K * K <= OUT_LANES, "d_latent too large for lane-packed output"

    # unit_variance_constraint
    psi = jnp.exp(logpsi)
    sigma_diag = jnp.sum(C * C, axis=0) + psi
    Cn = C / jnp.sqrt(sigma_diag)[None, :]                # C / sqrt(sigma)
    log_psin = logpsi - jnp.log(sigma_diag)               # log(psi / sigma)
    inv_psin = sigma_diag / psi                           # 1 / (psi / sigma)
    row_c = -0.5 * (LOG2PI + log_psin)
    log_abs_a2 = jnp.log(jnp.abs(a2))

    rowpack = jnp.zeros((8, Dp), jnp.float32)             # (8, Dp)-aligned, one DMA
    rowpack = rowpack.at[0, :d_out].set(a2)
    rowpack = rowpack.at[1, :d_out].set(t2)
    rowpack = rowpack.at[2, :d_out].set(log_abs_a2)
    rowpack = rowpack.at[3, :d_out].set(inv_psin)
    rowpack = rowpack.at[4, :d_out].set(row_c)

    # Pre-transposed, lane-dense (Dp, 128) reduction matrices (NN layout for the MXU):
    #   col 0            -> per-sample scalar partial (also encodes the validity mask)
    #   cols 1..1+K      -> u_b[k]      = sum_d wd[b,d] * Cn[k,d]
    #   cols 1+K..1+K+K^2-> capw_b[k,l] = sum_d w[b,d]  * Cn[k,d] * Cn[l,d]
    Rp = jnp.zeros((Dp, OUT_LANES), jnp.float32).at[:d_out, 0].set(1.0)
    Ru = jnp.zeros((Dp, OUT_LANES), jnp.float32).at[:d_out, 1:1 + K].set(Cn.T)
    gram = (Cn[:, None, :] * Cn[None, :, :]).reshape(K * K, d_out).T   # (d_out, K*K)
    Rg = jnp.zeros((Dp, OUT_LANES), jnp.float32).at[:d_out, 1 + K:1 + K + K * K].set(gram)

    return dict(K=K, d_out=d_out, Dp=Dp, rho=float(zero_threshold),
                log_rho=math.log(float(zero_threshold)),
                rowpack=rowpack, Rp=Rp, Ru=Ru, Rg=Rg)


def _zif_core(tp, mup, qp, zifp):
    """Runs the ZIF kernel on already-padded (Bp, Dp) operands; returns (Bp, 128)."""
    Bp, Dp = tp.shape
    td = _pick_tile(Dp, (1024, 512, 256, 128))
    tb = min(Bp, 256)
    assert Bp % tb == 0

    kern = functools.partial(_zif_kernel, zifp["rho"], zifp["log_rho"])
    return pl.pallas_call(
        kern,
        grid=(Bp // tb, Dp // td),
        in_specs=[
            pl.BlockSpec((tb, td), lambda i, j: (i, j)),           # targets
            pl.BlockSpec((tb, td), lambda i, j: (i, j)),           # mu
            pl.BlockSpec((tb, td), lambda i, j: (i, j)),           # q
            pl.BlockSpec((8, td), lambda i, j: (0, j)),            # row constants pack
            pl.BlockSpec((td, OUT_LANES), lambda i, j: (j, 0)),    # R_partial
            pl.BlockSpec((td, OUT_LANES), lambda i, j: (j, 0)),    # R_u
            pl.BlockSpec((td, OUT_LANES), lambda i, j: (j, 0)),    # R_gram
        ],
        out_specs=pl.BlockSpec((tb, OUT_LANES), lambda i, j: (i, 0)),
        out_shape=jax.ShapeDtypeStruct((Bp, OUT_LANES), jnp.float32),
        compiler_params=pltpu.CompilerParams(
            dimension_semantics=("parallel", "arbitrary"),
            vmem_limit_bytes=VMEM_LIMIT),
    )(tp, mup, qp, zifp["rowpack"], zifp["Rp"], zifp["Ru"], zifp["Rg"])


def _zif_finish(out, B, K):
    """Tiny (K x K) Woodbury finish — plain JAX glue, negligible compute."""
    partial = out[:B, 0]
    u = out[:B, 1:1 + K]
    cap = out[:B, 1 + K:1 + K + K * K].reshape(B, K, K) + jnp.eye(K, dtype=jnp.float32)[None]
    _, logdet_cap = jnp.linalg.slogdet(cap)
    sol = jnp.linalg.solve(cap, u[..., None])[..., 0]
    return partial - 0.5 * logdet_cap + 0.5 * jnp.sum(u * sol, axis=-1)


def zif_log_likelihood(targets, mu, q, params, zero_threshold, zifp=None):
    """ZIF_Loglikelihood on explicit (mu, q): per-sample log-likelihood, shape (B,)."""
    zifp = pack_zif_params(params, zero_threshold) if zifp is None else zifp
    B, d_out = targets.shape
    Dp = zifp["Dp"]
    tb = min(_round_up(B, 8), 256)
    Bp = _round_up(B, tb)

    if (B, d_out) == (Bp, Dp):                           # already aligned: no re-pad
        tp, mup, qp = (targets.astype(jnp.float32), mu.astype(jnp.float32),
                       q.astype(jnp.float32))
    else:
        def pad(a, fill):                                # safe/finite fill values
            return jnp.full((Bp, Dp), fill, jnp.float32).at[:B, :d_out].set(
                a.astype(jnp.float32))
        tp, mup, qp = pad(targets, 0.0), pad(mu, 1.0), pad(q, 0.5)

    return _zif_finish(_zif_core(tp, mup, qp, zifp), B, zifp["K"])


def ziffa_log_likelihood(x_nchw, targets, params, zero_threshold, enc=None, zifp=None):
    """ZeroInflatedFlowFA.log_likelihood(*batch): fused path that keeps the encoder's
    padded (Bp, Dp) layout end-to-end (no slice + re-pad of mu/q between kernels)."""
    enc = pack_encoder_params(params) if enc is None else enc
    zifp = pack_zif_params(params, zero_threshold) if zifp is None else zifp
    out, B, Bp = _encoder_padded(x_nchw, enc)
    Dp = enc["Dp"]
    mup, qp = out[:, :Dp], out[:, Dp:]
    tp = jnp.zeros((Bp, Dp), jnp.float32).at[:B, :zifp["d_out"]].set(
        targets.astype(jnp.float32))
    return _zif_finish(_zif_core(tp, mup, qp, zifp), B, zifp["K"])


def ziffa_loss(x_nchw, targets, params, zero_threshold, use_avg=False,
               enc=None, zifp=None):
    ll = ziffa_log_likelihood(x_nchw, targets, params, zero_threshold, enc, zifp)
    agg = jnp.mean if use_avg else jnp.sum
    return agg(-ll)


# --------------------------- pure-JAX references (checks) --------------------------
def _encoder_ref(x_nchw, params):
    x = x_nchw.reshape(x_nchw.shape[0], -1).astype(jnp.float32)
    z_mu = x @ params["w_mu"] + params["b_mu"]
    z_q = x @ params["w_q"] + params["b_q"]
    mu = jnp.where(z_mu > 0, z_mu + 1.0, jnp.exp(jnp.minimum(z_mu, 0.0))) + 1e-6
    q = jnp.clip(jax.nn.sigmoid(z_q), 1e-6, 1.0 - 1e-6)
    return mu, q


def _zif_ll_ref(targets, mu, q, params, rho):
    C = params["C"]
    psi = jnp.exp(params["logpsi"][0])
    a2 = params["a2"][0]
    t2 = params["t2"][0]
    K = C.shape[0]
    sigma_diag = jnp.sum(C * C, axis=0) + psi
    Cn = C / jnp.sqrt(sigma_diag)
    psin = psi / sigma_diag
    q = jnp.clip(q, 1e-6, 1.0 - 1e-6)
    mb = targets >= rho
    m = mb.astype(jnp.float32)
    x1 = jnp.maximum(jnp.where(mb, targets - rho, 1.0), 1e-12)
    lx1 = jnp.log(x1)
    x3 = a2 * lx1 + t2
    tr = jnp.exp(x3)
    logdet = -lx1 + jnp.log(jnp.abs(a2)) + x3
    uni = jnp.sum(jnp.where(~mb, jnp.log(1.0 - q) - jnp.log(rho), 0.0), axis=1)
    w = m / psin
    delta = tr - mu
    quad = jnp.sum(w * delta * delta, axis=1)
    n = jnp.sum(m, axis=1)
    slp = jnp.sum(m * jnp.log(psin), axis=1)
    sld = jnp.sum(m * logdet, axis=1)
    slq = jnp.sum(m * jnp.log(q), axis=1)
    u = (w * delta) @ Cn.T
    cap = jnp.eye(K, dtype=jnp.float32) + jnp.einsum('bd,kd,ld->bkl', w, Cn, Cn)
    _, ldc = jnp.linalg.slogdet(cap)
    sol = jnp.linalg.solve(cap, u[..., None])[..., 0]
    mahal = quad - jnp.sum(u * sol, axis=-1)
    return uni + sld + slq - 0.5 * (n * LOG2PI + slp + ldc + mahal)


# ------------------------------------- main ----------------------------------------
if __name__ == "__main__":
    key = jax.random.PRNGKey(0)
    ks = jax.random.split(key, 9)

    B, Cin, H, W = 2, 4, 16, 16
    d_out, d_latent = 32, 4
    zero_threshold = 0.005
    init_psi_diag_coef = 0.1
    init_C_coef = 0.1
    d_in = Cin * H * W

    params = dict(
        # stand-in encoding model (linear readout) weights
        w_mu=jax.random.normal(ks[0], (d_in, d_out), jnp.float32) / math.sqrt(d_in),
        b_mu=jnp.zeros((1, d_out), jnp.float32),
        w_q=jax.random.normal(ks[1], (d_in, d_out), jnp.float32) / math.sqrt(d_in),
        b_q=jnp.zeros((1, d_out), jnp.float32),
        # ZIFFA parameters: C ~ U[0,1)*init_C_coef, logpsi = log(ones*coef)
        C=jax.random.uniform(ks[2], (d_latent, d_out), jnp.float32) * init_C_coef,
        logpsi=jnp.log(jnp.ones((1, d_out), jnp.float32) * init_psi_diag_coef),
        # learnable Affine of the 'learned-mini' flow (per-neuron transform)
        a2=1.0 + 0.05 * jax.random.normal(ks[3], (1, d_out), jnp.float32),
        t2=0.05 * jax.random.normal(ks[4], (1, d_out), jnp.float32),
    )

    # deterministic example inputs
    x = jax.random.normal(ks[5], (B, Cin, H, W), jnp.float32)          # NCHW images
    zero_mask = jax.random.bernoulli(ks[6], 0.3, (B, d_out))
    below = jax.random.uniform(ks[7], (B, d_out), jnp.float32,
                               minval=0.0, maxval=zero_threshold * 0.9)
    above = zero_threshold + 0.01 + jnp.abs(jax.random.normal(ks[8], (B, d_out),
                                                              jnp.float32))
    targets = jnp.where(zero_mask, below, above)                       # zero-inflated responses

    # one-time packing (kept resident across training steps)
    enc = pack_encoder_params(params)
    zifp = pack_zif_params(params, zero_threshold)

    mu, q = encoder_forward(x, params, enc)                            # forward(): (mu, q)
    ll = zif_log_likelihood(targets, mu, q, params, zero_threshold, zifp)
    ll_fused = ziffa_log_likelihood(x, targets, params, zero_threshold, enc, zifp)
    loss = ziffa_loss(x, targets, params, zero_threshold, enc=enc, zifp=zifp)
    jax.block_until_ready((mu, q, ll, ll_fused, loss))

    # correctness checks against pure-JAX references
    mu_ref, q_ref = _encoder_ref(x, params)                            # f32 matmul reference
    ll_ref = _zif_ll_ref(targets, mu, q, params, zero_threshold)       # same (mu, q) inputs

    assert mu.shape == (B, d_out) and q.shape == (B, d_out) and ll.shape == (B,)
    assert bool(jnp.all(jnp.isfinite(mu)) & jnp.all(jnp.isfinite(q))
                & jnp.all(jnp.isfinite(ll)) & jnp.all(jnp.isfinite(ll_fused))
                & jnp.isfinite(loss))
    # loose tolerance on the encoder: kernel matmul runs in bf16 (f32 accumulation)
    assert bool(jnp.allclose(mu, mu_ref, rtol=1e-1, atol=1e-1))
    assert bool(jnp.allclose(q, q_ref, rtol=1e-1, atol=1e-1))
    assert bool(jnp.allclose(ll, ll_ref, rtol=1e-2, atol=1e-2))
    assert bool(jnp.allclose(ll_fused, ll, rtol=1e-4, atol=1e-4))
    print("KERNEL_OK")
</pallas_src>

<mosaic_0001>
module attributes {stable_mosaic.version = 11 : i64} {
  func.func @_encoder_kernel(%arg0: i32, %arg1: i32, %arg2: i32, %arg3: memref<8x512xbf16, #tpu.memory_space<vmem>>, %arg4: memref<512x128xbf16, #tpu.memory_space<vmem>>, %arg5: memref<1x128xf32, #tpu.memory_space<vmem>>, %arg6: memref<8x128xf32, #tpu.memory_space<vmem>>) attributes {dimension_semantics = [#tpu.dimension_semantics<parallel>, #tpu.dimension_semantics<parallel>, #tpu.dimension_semantics<arbitrary>], iteration_bounds = array<i64: 1, 2, 2>, scalar_prefetch = 0 : i64, scratch_operands = 0 : i64, tpu.core_type = #tpu.core_type<tc>, window_params = [{transform_indices = @transform_0, window_bounds = array<i64: 8, 512>}, {transform_indices = @transform_1, window_bounds = array<i64: 512, 128>}, {transform_indices = @transform_2, window_bounds = array<i64: 1, 128>}, {transform_indices = @transform_3, window_bounds = array<i64: 8, 128>}]} {
    %c128_i32 = arith.constant 128 : i32
    %0 = arith.muli %arg1, %c128_i32 : i32
    %c128_i32_0 = arith.constant 128 : i32
    %1 = arith.cmpi slt, %0, %c128_i32_0 : i32
    %c0_i32 = arith.constant 0 : i32
    %2 = arith.cmpi eq, %arg2, %c0_i32 : i32
    %3 = arith.extui %2 : i1 to i32
    %c0_i32_1 = arith.constant 0 : i32
    %4 = arith.cmpi ne, %3, %c0_i32_1 : i32
    scf.if %4 {
      %cst_10 = arith.constant 0.000000e+00 : f32
      %14 = vector.broadcast %cst_10 : f32 to vector<8x128xf32>
      %c0_11 = arith.constant 0 : index
      %c0_12 = arith.constant 0 : index
      %15 = vector.load %arg6[%c0_11, %c0_12] : memref<8x128xf32, #tpu.memory_space<vmem>>, vector<8x128xf32>
      tpu.vector_store %arg6[%c0_11, %c0_12], %14 {strides = array<i32>} : memref<8x128xf32, #tpu.memory_space<vmem>>, vector<8x128xf32>,
    } else {
    }
    %c0 = arith.constant 0 : index
    %c0_2 = arith.constant 0 : index
    %5 = vector.load %arg6[%c0, %c0_2] : memref<8x128xf32, #tpu.memory_space<vmem>>, vector<8x128xf32>
    %c0_3 = arith.constant 0 : index
    %c0_4 = arith.constant 0 : index
    %6 = vector.load %arg3[%c0_3, %c0_4] : memref<8x512xbf16, #tpu.memory_space<vmem>>, vector<8x512xbf16>
    %c0_5 = arith.constant 0 : index
    %c0_6 = arith.constant 0 : index
    %7 = vector.load %arg4[%c0_5, %c0_6] : memref<512x128xbf16, #tpu.memory_space<vmem>>, vector<512x128xbf16>
    %cst = arith.constant dense<0.000000e+00> : vector<8x128xf32>
    %8 = tpu.matmul %6, %7, %cst {dimension_numbers = #tpu.dot_dimension_numbers<[1], [0], [0], [1], [0, 0, 1, 1], [], []>} : vector<8x512xbf16>, vector<512x128xbf16>, vector<8x128xf32> -> vector<8x128xf32>
    %9 = arith.addf %5, %8 : vector<8x128xf32>
    %c0_7 = arith.constant 0 : index
    %c0_8 = arith.constant 0 : index
    %10 = vector.load %arg6[%c0_7, %c0_8] : memref<8x128xf32, #tpu.memory_space<vmem>>, vector<8x128xf32>
    tpu.vector_store %arg6[%c0_7, %c0_8], %9 {strides = array<i32>} : memref<8x128xf32, #tpu.memory_space<vmem>>, vector<8x128xf32>,
    %c1_i32 = arith.constant 1 : i32
    %11 = arith.cmpi eq, %arg2, %c1_i32 : i32
    %12 = arith.extui %11 : i1 to i32
    %c0_i32_9 = arith.constant 0 : i32
    %13 = arith.cmpi ne, %12, %c0_i32_9 : i32
    scf.if %13 {
      %c0_10 = arith.constant 0 : index
      %c0_11 = arith.constant 0 : index
      %14 = vector.load %arg6[%c0_10, %c0_11] : memref<8x128xf32, #tpu.memory_space<vmem>>, vector<8x128xf32>
      %c0_12 = arith.constant 0 : index
      %c0_13 = arith.constant 0 : index
      %15 = vector.load %arg5[%c0_12, %c0_13] : memref<1x128xf32, #tpu.memory_space<vmem>>, vector<1x128xf32>
      %16 = vector.broadcast %15 : vector<1x128xf32> to vector<8x128xf32>
      %17 = arith.addf %14, %16 : vector<8x128xf32>
      %cst_14 = arith.constant 0.000000e+00 : f32
      %18 = vector.broadcast %cst_14 : f32 to vector<8x128xf32>
      %19 = arith.cmpf ogt, %17, %18 : vector<8x128xf32>
      %cst_15 = arith.constant 1.000000e+00 : f32
      %20 = vector.broadcast %cst_15 : f32 to vector<8x128xf32>
      %21 = arith.addf %17, %20 : vector<8x128xf32>
      %cst_16 = arith.constant 0.000000e+00 : f32
      %22 = vector.broadcast %cst_16 : f32 to vector<8x128xf32>
      %23 = arith.minimumf %17, %22 : vector<8x128xf32>
      %24 = math.exp %23 : vector<8x128xf32>
      %25 = arith.select %19, %21, %24 : vector<8x128xi1>, vector<8x128xf32>
      %cst_17 = arith.constant 9.99999997E-7 : f32
      %26 = vector.broadcast %cst_17 : f32 to vector<8x128xf32>
      %27 = arith.addf %25, %26 : vector<8x128xf32>
      %28 = arith.negf %17 : vector<8x128xf32>
      %29 = math.exp %28 : vector<8x128xf32>
      %cst_18 = arith.constant 1.000000e+00 : f32
      %30 = vector.broadcast %cst_18 : f32 to vector<8x128xf32>
      %31 = arith.addf %30, %29 : vector<8x128xf32>
      %32 = arith.divf %30, %31 : vector<8x128xf32>
      %cst_19 = arith.constant 9.99999997E-7 : f32
      %cst_20 = arith.constant 0.999998986 : f32
      %33 = vector.broadcast %cst_19 : f32 to vector<8x128xf32>
      %34 = arith.maximumf %33, %32 : vector<8x128xf32>
      %35 = vector.broadcast %cst_20 : f32 to vector<8x128xf32>
      %36 = arith.minimumf %35, %34 : vector<8x128xf32>
      %37 = arith.select %1, %27, %36 : vector<8x128xf32>
      %c0_21 = arith.constant 0 : index
      %c0_22 = arith.constant 0 : index
      %38 = vector.load %arg6[%c0_21, %c0_22] : memref<8x128xf32, #tpu.memory_space<vmem>>, vector<8x128xf32>
      tpu.vector_store %arg6[%c0_21, %c0_22], %37 {strides = array<i32>} : memref<8x128xf32, #tpu.memory_space<vmem>>, vector<8x128xf32>,
    } else {
    }
    return
  }
  func.func @transform_0(%arg0: i32, %arg1: i32, %arg2: i32) -> (i32, i32) {
    %c0_i32 = arith.constant 0 : i32
    return %arg0, %arg2 : i32, i32
  }
  func.func @transform_1(%arg0: i32, %arg1: i32, %arg2: i32) -> (i32, i32) {
    %c0_i32 = arith.constant 0 : i32
    return %arg2, %arg1 : i32, i32
  }
  func.func @transform_2(%arg0: i32, %arg1: i32, %arg2: i32) -> (i32, i32) {
    %c0_i32 = arith.constant 0 : i32
    %c0_i32_0 = arith.constant 0 : i32
    return %c0_i32, %arg1 : i32, i32
  }
  func.func @transform_3(%arg0: i32, %arg1: i32, %arg2: i32) -> (i32, i32) {
    %c0_i32 = arith.constant 0 : i32
    return %arg0, %arg1 : i32, i32
  }
}

</mosaic_0001>

<bundles_post_ra>
// kernel: tpu_custom_call.1
= control target key start
LH: loop header
LB: loop body
LE: loop exit
PB: predicated region body
PF: predicated region fallthrough
CT: control target
= control target key end

     0   :  { %s1767_s0 = inlined_call_operand.hbm [shape: bf16[8,1024], index: 0, kind: input, shape index: {}]   ;;  %s1768_s1 = inlined_call_operand.hbm [shape: bf16[1024,256], index: 1, kind: input, shape index: {}]   ;;  %s1769_s2 = inlined_call_operand.hbm [shape: f32[1,256], index: 2, kind: input, shape index: {}]   ;;  %s1770_s3 = inlined_call_operand.hbm [shape: f32[8,256], index: 3, kind: output, shape index: {}]  }
   0x1   :  { %1775 = sst [smem:[#allocation19_spill]] %s1767_s0 }
   0x2   :  { %1776 = sst [smem:[#allocation20_spill]] %s1768_s1 }
   0x3   :  { %1777 = sst [smem:[#allocation21_spill]] %s1769_s2 }
   0x4   :  { %1778 = sst [smem:[#allocation22_spill]] %s1770_s3 }
   0x5   :  { %8 = vsyncpa [#allocation3], 0 }
   0x6   :  { %10 = vsyncpa [#allocation3 + $0x1], 0 }
   0x7   :  { %11 = vsyncpa [#allocation6], 0 }
   0x8   :  { %13 = vsyncpa [#allocation6 + $0x1], 0 }
   0x9   :  { %14 = vsyncpa [#allocation4], 0 }
   0xa   :  { %16 = vsyncpa [#allocation4 + $0x1], 0  ;;  %s1421_s12 = smov 0   ;;  %s1423_s13 = smov 0  }
   0xb   :  { %s1425_s14 = smov 0   ;;  %s1427_s15 = smov 0  }
   0xc   :  { %s1429_s16 = smov 0   ;;  %s1431_s17 = smov 0  }
   0xd   :  { %s1433_s18 = smov 0   ;;  %s1435_s19 = smov 0  }
   0xe   :  { %s1437_s20 = smov 0   ;;  %s1439_s21 = smov 0  }
   0xf   :  { %s1441_s22 = smov 0   ;;  %s1443_s23 = smov 0  }
  0x10   :  { %s1445_s24 = smov 0   ;;  %s1447_s25 = smov 0  }
  0x11 LB: > { %1779 = sst [smem:[#allocation13_spill]] %s1379_s21  ;;  %s37_s26 = sadd.s32 1, %s1391_s24  ;;  %s1395_s25 = sphi %s1447_s25, %s22_s25   ;;  %s1391_s24 = sphi %s1445_s24, %s1819_s24   ;;  %s1387_s23 = sphi %s1443_s23, %s1807_s23   ;;  %s1383_s22 = sphi %s1441_s22, %s1818_s22   ;;  %s1379_s21 = sphi %s1439_s21, %s1806_s21   ;;  %s1375_s20 = sphi %s1437_s20, %s1817_s20   ;;  %s1371_s19 = sphi %s1435_s19, %s1816_s19   ;;  %s1367_s18 = sphi %s1433_s18, %s1815_s18   ;;  %s1363_s17 = sphi %s1431_s17, %s1814_s17   ;;  %s1359_s16 = sphi %s1429_s16, %s1813_s16   ;;  %s1355_s15 = sphi %s1427_s15, %s1812_s15   ;;  %s1351_s14 = sphi %s1425_s14, %s1811_s14   ;;  %s1347_s13 = sphi %s1423_s13, %s1810_s13   ;;  %s1343_s12 = sphi %s1421_s12, %s1809_s12  }
  0x12   : > { %1780 = sst [smem:[#allocation14_spill]] %s1383_s22  ;;  %p58_p0 = scmp.eq.s32.totalorder %s1395_s25, 0 }
  0x13   : > { %1781 = sst [smem:[#allocation15_spill]] %s1387_s23  ;;  %p85_p1 = scmp.ne.s32.totalorder %s1363_s17, %s1359_s16 }
  0x14   : > { %p91_p2 = scmp.ne.s32.totalorder %s1359_s16, %s1355_s15  ;;  %p1026_p4 = scmp.lt.s32.totalorder %s1395_s25, 4 }
  0x15   : > { %p87_p3 = por %p85_p1, %p58_p0  ;;  %s191_s28 = sand.u32 1, %s1395_s25  }
  0x16   : > { %s193_s29 = sand.u32 1, %s1363_s17   ;;  %s971_s4 = sshll.u32 %s1387_s23, 7 }
  0x17   : > { %s826_s30 = sshll.u32 %s193_s29, 8  ;;  %s200_s5 = sadd.s32 %s1391_s24, %s971_s4 }
  0x18   : > { %s195_s6 = scalar_lea.vmem [#allocation5], %s826_s30  ;;  %s829_s8 = sshll.u32 %s200_s5, 2 }
  0x19   : > { %s205_s7 = sshll.u32 %s195_s6, 4  ;;  %s1782_s1 = sld [smem:[#allocation20_spill]]  ;;  %s206_s7 = int_to_ptr.vmem [resolvable:$true] %s205_s7 }
  0x1a   : > { %p1016_p5 = pnand %p1026_p4, %p87_p3  ;;  %s1510_s4 = scalar_lea.sflag [#allocation6], %s191_s28 }
  0x1b   : > { %s1397_s30 = smov 128   ;;  %s1398_s5 = smov 64  }
  0x1c   : > { %s1399_s6 = smov 4   ;;  %p830_p6 = scmp.ge.s32.totalorder %s1395_s25, 1 }
  0x1d   : > { %p230_p7 = scmp.lt.s32.totalorder %s1395_s25, 5  ;;  %s1520_s9 = sadd.s32 4294967295, %s1395_s25  }
  0x1e   : > { %s34_s28 = sadd.s32 1, %s1387_s23  ;;  %s50_s10 = sadd.s32 1, %s1375_s20 }
  0x1f   : > { %s202_s11 = scalar_lea.hbm %s1782_s1, %s829_s8  ;;  %p1515_p8 = pnand %p830_p6, %p230_p7 }
  0x20   : > { %s203_s29 = sshll.u32 %s202_s11, 4  ;;  %p35_p9 = scmp.ge.s32.totalorder %s34_s28, 2  ;;  %s204_s29 = int_to_ptr.hbm [resolvable:$true] %s203_s29 }
  0x21   : > { %1018 = dma.hbm_to_vmem [thread:$0]  (!%p1016_p5), %s204_s29, 4096, %s206_s7, %s1510_s4, %s1397_s30, %s1398_s5, %s1399_s6  }
  0x22   : > { %p57_p10 = scmp.ne.s32.totalorder %s1375_s20, %s1371_s19  ;;  %p63_p11 = scmp.ne.s32.totalorder %s1371_s19, %s1367_s18 }
  0x23   : > { %p64_p12 = scmp.eq.s32.totalorder %s1520_s9, 0  ;;  %s1821_s28 = smov (%p35_p9, %s34_s28), 0 }
  0x24   : > { %1784 = sst [smem:[#allocation16_spill]] %s1821_s28  ;;  %s1823_s26 = smov (!%p35_p9, %s37_s26), %s1391_s24 }
  0x25   : > { %s46_s7 = ssub.s32 %s1387_s23, %s1821_s28  ;;  %p1538_p13 = por %p58_p0, %p57_p10 }
  0x26   : > { %p39_p1 = scmp.ge.s32.totalorder %s1823_s26, 2  ;;  %p48_p3 = scmp.eq.s32.totalorder %s46_s7, 0 }
  0x27   : > { %p1544_p5 = por %p64_p12, %p63_p11  ;;  %p1553_p6 = por %p91_p2, %p64_p12 }
  0x28   : > { %s1825_s26 = smov (%p39_p1, %s1823_s26), 0  ;;  %s169_s6 = sand.u32 1, %s1375_s20  }
  0x29   : > { %1788 = sst [smem:[#allocation17_spill]] %s1825_s26  ;;  %s74_s5 = ssub.s32 %s1391_s24, %s1825_s26 }
  0x2a   : > { %s1560_s30 = scalar_select %p48_p3, %s1375_s20, %s50_s10  }
  0x2b   : > { %s75_s27 = sor.u32 %s74_s5, %s46_s7  ;;  %s823_s15 = sshll.u32 %s169_s6, 4 }
  0x2c   : > { %1789 = sst [smem:[#allocation18_spill]] %s1560_s30  ;;  %p76_p7 = scmp.eq.s32.totalorder %s75_s27, 0 }
  0x2d   : > { %s970_s1 = sshll.u32 %s1387_s23, 4  ;;  %s1790_s28 = sadd.s32 1, %s1363_s17 }
  0x2e   : > { %s1569_s3 = scalar_select %p76_p7, %s1363_s17, %s1790_s28  }
  0x2f   : > { %s1791_s0 = sld [smem:[#allocation19_spill]]  ;;  %s173_s26 = scalar_lea.vmem [#allocation2], %s823_s15 }
  0x30   : > { %s184_s7 = sshll.u32 %s173_s26, 4  ;;  %p1013_p2 = pnand %p1026_p4, %p1538_p13  ;;  %s185_s7 = int_to_ptr.vmem [resolvable:$true] %s184_s7 }
  0x31   : > { %s170_s23 = scalar_lea.sflag [#allocation3], %s169_s6  ;;  %s820_s28 = sadd.s32 4294967294, %s1395_s25  }
  0x32   : > { %p102_p9 = scmp.eq.s32.totalorder %s74_s5, 0  ;;  %s104_s30 = sadd.s32 1, %s1351_s14 }
  0x33   : > { %p111_p10 = scmp.ne.s32.totalorder %s1351_s14, %s1347_s13  ;;  %p117_p11 = scmp.ne.s32.totalorder %s1347_s13, %s1343_s12 }
  0x34   : > { %p143_p13 = scmp.eq.s32.totalorder %s1520_s9, 3  ;;  %p149_p7 = scmp.eq.s32.totalorder %s820_s28, 3 }
  0x35   : > { %s180_s10 = scalar_lea.hbm %s1791_s0, %s970_s1  ;;  %p1589_p1 = por %p111_p10, %p58_p0 }
  0x36   : > { %s182_s27 = sshll.u32 %s180_s10, 4  ;;  %p1595_p3 = por %p117_p11, %p64_p12  ;;  %s183_s27 = int_to_ptr.hbm [resolvable:$true] %s182_s27 }
  0x37   : > { %1015 = dma.hbm_to_vmem [thread:$0]  (!%p1013_p2), %s183_s27, 256, %s185_s7, %s170_s23  }
  0x38   : > { %s1585_s1 = scalar_select %p102_p9, %s1351_s14, %s104_s30  }
  0x39   : > { %s217_s23 = sand.u32 1, %s1351_s14   ;;  %s1794_s2 = sld [smem:[#allocation21_spill]] }
  0x3a   : > { %p1605_p2 = por %p143_p13, %p111_p10  ;;  %p1609_p0 = por %p149_p7, %p117_p11 }
  0x3b   : > { %s218_s10 = scalar_lea.vmem [#allocation7], %s217_s23  ;;  %p1019_p12 = pnand %p1026_p4, %p1589_p1 }
  0x3c   : > { %s225_s7 = sshll.u32 %s218_s10, 4  ;;  %s236_s27 = sand.u32 (!%p1515_p8), 1, %s1371_s19   ;;  %s226_s7 = int_to_ptr.vmem [resolvable:$true] %s225_s7 }
  0x3d   : > { %234 = sbr.rel (%p1515_p8) target bundleno = 327 (0x147), region = 32  ;;  %s1621_s28 = sshll.u32 (!%p1515_p8), %s236_s27, 4 }
  0x3e   : > { %s237_s26 = scalar_lea.sflag (!%p1515_p8), [#allocation3], %s236_s27  ;;  %s240_s11 = scalar_lea.vmem (!%p1515_p8), [#allocation2], %s1621_s28 }
  0x3f   : > { %s221_s5 = scalar_lea.hbm %s1794_s2, %s1391_s24 }
  0x40   : > { %s223_s15 = sshll.u32 %s221_s5, 4  ;;  %s224_s15 = int_to_ptr.hbm [resolvable:$true] %s223_s15 }
  0x41   : > { %1021 = dma.hbm_to_vmem [thread:$0]  (!%p1019_p12), %s224_s15, 16, %s226_s7, %s1510_s4  }
  0x42   : > { %1326 = dma.done.wait (%p1544_p5), %s237_s26, 256  }
  0x43   : > { %1328 = vsyncadd (%p1544_p5), %s237_s26, 4294967040  ;;  %s246_s4 = sand.u32 1, %s1520_s9   ;;  %s248_s21 = sand.u32 1, %s1359_s16  }
  0x44   : > { %s832_s8 = sshll.u32 %s248_s21, 8  ;;  %s247_s23 = scalar_lea.sflag [#allocation6], %s246_s4 }
  0x45   : > { %s1630_s5 = scalar_lea.vmem [#allocation5], %s832_s8 }
  0x46   : > { %1330 = dma.done.wait (%p1553_p6), %s247_s23, 4096  }
  0x47   : > { %1332 = vsyncadd (%p1553_p6), %s247_s23, 4294963200  ;;  %s1637_s15 = sand.u32 1, %s1347_s13  }
  0x48   : > { %s259_s18 = scalar_lea.vmem [#allocation7], %s1637_s15 }
  0x49   : > { %1334 = dma.done.wait (%p1595_p3), %s247_s23, 16  }
  0x4a   : > { %1336 = vsyncadd (%p1595_p3), %s247_s23, 4294967280  ;;  %s1797_s9 = sld [smem:[#allocation14_spill]]  ;;  %s833_s10 = sshll.u32 %s1637_s15, 3 }
  0x4b   : > { %s1650_s29 = scalar_lea.vmem [#allocation8], %s833_s10  ;;  %s1799_s26 = sld [smem:[#allocation13_spill]] }
  0x50   : > { %s834_s7 = sshll.u32 %s1797_s9, 7 }
  0x51   : > { %p1646_p4 = scmp.lt.s32.totalorder %s834_s7, 128  ;;  %p835_p8 = scmp.ne.s32.totalorder %s1799_s26, 0 }
  0x53   : > { %299 = sbr.rel (%p835_p8) target bundleno = 90 (0x5a), region = 48 }
  0x58   : > { %v1400_v0 = vmov 0.0  }
  0x59   : > { %300 = vst [vmem:[%s1650_s29] sm:$0xff] %v1400_v0 }
  0x5a PF: > { %v979_v1 = vld [vmem:[%s1630_s5 + $0x38] sm:$0xff]  ;;  %v978_v5 = vld [vmem:[%s1630_s5 + $0x30] sm:$0xff]  ;;  %v977_v9 = vld [vmem:[%s1630_s5 + $0x28] sm:$0xff]  ;;  %s1800_s22 = sld [smem:[#allocation13_spill]] }
  0x5b   : > { %v987_v2 = vld [vmem:[%s1630_s5 + $0x78] sm:$0xff]  ;;  %574 = vmatpush.bf16.msra.mxu0 %v979_v1  ;;  %v986_v6 = vld [vmem:[%s1630_s5 + $0x70] sm:$0xff]  ;;  %v985_v10 = vld [vmem:[%s1630_s5 + $0x68] sm:$0xff] }
  0x5c   : > { %v995_v3 = vld [vmem:[%s1630_s5 + $0xb8] sm:$0xff]  ;;  %587 = vmatpush.bf16.msra.mxu1 %v987_v2  ;;  %v994_v7 = vld [vmem:[%s1630_s5 + $0xb0] sm:$0xff]  ;;  %v993_v11 = vld [vmem:[%s1630_s5 + $0xa8] sm:$0xff] }
  0x5d   : > { %v1003_v4 = vld [vmem:[%s1630_s5 + $0xf8] sm:$0xff]  ;;  %600 = vmatpush.bf16.msra.mxu2 %v995_v3  ;;  %v1002_v8 = vld [vmem:[%s1630_s5 + $0xf0] sm:$0xff]  ;;  %v1001_v12 = vld [vmem:[%s1630_s5 + $0xe8] sm:$0xff] }
  0x5e   : > { %613 = vmatpush.bf16.msra.mxu3 %v1003_v4  ;;  %v976_v13 = vld [vmem:[%s1630_s5 + $0x20] sm:$0xff]  ;;  %v975_v17 = vld [vmem:[%s1630_s5 + $0x18] sm:$0xff]  ;;  %v974_v21 = vld [vmem:[%s1630_s5 + $0x10] sm:$0xff] }
  0x5f   : > { %575 = vmatpush.bf16.msra.mxu0 %v978_v5  ;;  %v984_v14 = vld [vmem:[%s1630_s5 + $0x60] sm:$0xff]  ;;  %v983_v18 = vld [vmem:[%s1630_s5 + $0x58] sm:$0xff]  ;;  %v982_v22 = vld [vmem:[%s1630_s5 + $0x50] sm:$0xff] }
  0x60   : > { %588 = vmatpush.bf16.msra.mxu1 %v986_v6  ;;  %v992_v15 = vld [vmem:[%s1630_s5 + $0xa0] sm:$0xff]  ;;  %v991_v19 = vld [vmem:[%s1630_s5 + $0x98] sm:$0xff]  ;;  %v990_v23 = vld [vmem:[%s1630_s5 + $0x90] sm:$0xff]  ;;  %p964_p5 = scmp.ne.s32.totalorder %s1800_s22, 1 }
  0x61   : > { %601 = vmatpush.bf16.msra.mxu2 %v994_v7  ;;  %v1000_v16 = vld [vmem:[%s1630_s5 + $0xe0] sm:$0xff]  ;;  %v999_v20 = vld [vmem:[%s1630_s5 + $0xd8] sm:$0xff]  ;;  %v998_v24 = vld [vmem:[%s1630_s5 + $0xd0] sm:$0xff] }
  0x62   : > { %614 = vmatpush.bf16.msra.mxu3 %v1002_v8  ;;  %v973_v25 = vld [vmem:[%s1630_s5 + $0x8] sm:$0xff]  ;;  %v302_v27 = vld [vmem:[%s240_s11] sm:$0xff] }
  0x63   : > { %576 = vmatpush.bf16.msra.mxu0 %v977_v9  ;;  %v981_v26 = vld [vmem:[%s1630_s5 + $0x48] sm:$0xff]  ;;  %v370_v31 = vunpack.c.l.b16 %v302_v27  ;;  %v371_v32 = vunpack.c.h.b16 %v302_v27  ;;  %v972_v33 = vld [vmem:[%s1630_s5] sm:$0xff] }
  0x64   : > { %589 = vmatpush.bf16.msra.mxu1 %v985_v10  ;;  %v989_v28 = vld [vmem:[%s1630_s5 + $0x88] sm:$0xff]  ;;  %v980_v34 = vld [vmem:[%s1630_s5 + $0x40] sm:$0xff] }
  0x65   : > { %602 = vmatpush.bf16.msra.mxu2 %v993_v11  ;;  %v997_v29 = vld [vmem:[%s1630_s5 + $0xc8] sm:$0xff]  ;;  %v988_v37 = vld [vmem:[%s1630_s5 + $0x80] sm:$0xff]  ;;  %v374_v39 = vpack.c.b16 %v370_v31, %v370_v31  ;;  %v375_v40 = vpack.c.b16 %v371_v32, %v371_v32 }
  0x66   : > { %615 = vmatpush.bf16.msra.mxu3 %v1001_v12  ;;  %v303_v30 = vld [vmem:[%s240_s11 + $0x8] sm:$0xff]  ;;  %v996_v38 = vld [vmem:[%s1630_s5 + $0xc0] sm:$0xff] }
  0x67   : > { %577 = vmatpush.bf16.msra.mxu0 %v976_v13  ;;  %v372_v35 = vunpack.c.l.b16 %v303_v30  ;;  %v373_v36 = vunpack.c.h.b16 %v303_v30  ;;  %v301_v51 = vld [vmem:[%s1650_s29] sm:$0xff] }
  0x68   : > { %590 = vmatpush.bf16.msra.mxu1 %v984_v14 }
  0x69   : > { %603 = vmatpush.bf16.msra.mxu2 %v992_v15  ;;  %v376_v41 = vpack.c.b16 %v372_v35, %v372_v35  ;;  %v377_v42 = vpack.c.b16 %v373_v36, %v373_v36 }
  0x6a   : > { %616 = vmatpush.bf16.msra.mxu3 %v1000_v16 }
  0x6b   : > { %578 = vmatpush.bf16.msra.mxu0 %v975_v17 }
  0x6c   : > { %591 = vmatpush.bf16.msra.mxu1 %v983_v18 }
  0x6d   : > { %604 = vmatpush.bf16.msra.mxu2 %v991_v19 }
  0x6e   : > { %617 = vmatpush.bf16.msra.mxu3 %v999_v20 }
  0x6f   : > { %579 = vmatpush.bf16.msra.mxu0 %v974_v21 }
  0x70   : > { %592 = vmatpush.bf16.msra.mxu1 %v982_v22 }
  0x71   : > { %605 = vmatpush.bf16.msra.mxu2 %v990_v23 }
  0x72   : > { %618 = vmatpush.bf16.msra.mxu3 %v998_v24 }
  0x73   : > { %580 = vmatpush.bf16.msra.mxu0 %v973_v25 }
  0x74   : > { %593 = vmatpush.bf16.msra.mxu1 %v981_v26 }
  0x75   : > { %606 = vmatpush.bf16.msra.mxu2 %v989_v28 }
  0x76   : > { %619 = vmatpush.bf16.msra.mxu3 %v997_v29 }
  0x77   : > { %581 = vmatpush.bf16.msra.mxu0 %v972_v33 }
  0x78   : > { %594 = vmatpush.bf16.msra.mxu1 %v980_v34 }
  0x79   : > { %607 = vmatpush.bf16.msra.mxu2 %v988_v37 }
  0x7a   : > { %620 = vmatpush.bf16.msra.mxu3 %v996_v38  ;;  %582 = vmatmul.bf16.vlgmr.msra.gmra.mxu0 %v374_v39 }
  0x7b   : > { %595 = vmatmul.bf16.vlgmr.msra.gmra.mxu1 %v375_v40 }
  0x7c   : > { %608 = vmatmul.bf16.vlgmr.msra.gmra.mxu2 %v376_v41 }
  0x7d   : > { %621 = vmatmul.bf16.vlgmr.msra.gmra.mxu3 %v377_v42 }
  0xf7   : > { %v583_v43 = vpop.f32.mrf.mxu0 }
  0xf8   : > { %v596_v44 = vpop.f32.mrf.mxu1 }
  0xf9   : > { %v597_v45 = vadd.f32 %v596_v44, %v583_v43 }
  0xff   : > { %v609_v46 = vpop.f32.mrf.mxu2  ;;  %v585_v49 = vpop.f32.mrf.mxu0 }
 0x100   : > { %v622_v47 = vpop.f32.mrf.mxu3  ;;  %v610_v48 = vadd.f32 %v609_v46, %v597_v45  ;;  %v598_v50 = vpop.f32.mrf.mxu1 }
 0x102   : > { %v623_v52 = vadd.f32 %v622_v47, %v610_v48 }
 0x104   : > { %v626_v53 = vadd.f32 %v623_v52, %v301_v51  ;;  %631 = sbr.rel (%p964_p5) target bundleno = 306 (0x132), region = 52 }
 0x106   : > { %627 = vst [vmem:[%s1650_s29] sm:$0xff] %v626_v53 }
 0x107   : > { %v611_v54 = vpop.f32.mrf.mxu2 }
 0x108   : > { %v624_v55 = vpop.f32.mrf.mxu3 }
 0x109   : > { %v1144_v57 = vld [vmem:[%s259_s18] ss:$0 sm:$0xff]  ;;  %s666_s28 = scalar_select %p1646_p4, 1, 0 }
 0x10b   : > { %v667_v12 = vstv %s666_s28 }
 0x10c   : > { %vm668_vm5 = vcmp.eq.s32.totalorder %v667_v12, 1 }
 0x10d   : > { %v632_v56 = vld [vmem:[%s1650_s29] sm:$0xff] }
 0x10e   : > { %v637_v58 = vadd.f32 %v1144_v57, %v632_v56 }
 0x110   : > { %v965_v59 = vmul.f32 -1.442695, %v637_v58  ;;  %v640_v61 = vmin.f32 %v637_v58, 0.0  ;;  %v639_v5 = vadd.f32 1.0, %v637_v58  ;;  %vm638_vm2 = vcmp.gt.f32.partialorder %v637_v58, 0.0 }
 0x112   : > { %1145 = vpow2.f32 %v965_v59  ;;  %v641_v63 = vmul.f32 1.442695, %v640_v61 }
 0x118   : > { %v1146_v60 = vpop.eup %1145 }
 0x119   : > { %v648_v62 = vadd.f32 1.0, %v1146_v60 }
 0x11b   : > { %1147 = vrcp.f32 %v648_v62  ;;  %v660_v2 = vand.u32 2147483648, %v648_v62  ;;  %vm654_vm0 = vweird.f32 %v648_v62  ;;  %v658_v4 = vand.u32 2147483647, %v648_v62 }
 0x11c   : > { %1149 = vpow2.f32 %v641_v63 }
 0x11d   : > { %v661_v8 = vor.u32 1.1754944e-38, %v660_v2  ;;  %vm659_vm4 = vcmp.eq.f32.partialorder %v658_v4, 8.507059e+37 }
 0x121   : > { %v1148_v0 = vpop.eup %1147 }
 0x122   : > { %v650_v1 = vmul.f32 %v1148_v0, %v648_v62  ;;  %vm655_vm1 = vweird.f32 %v1148_v0  ;;  %v1150_v6 = vpop.eup %1149 }
 0x123   : > { %vm656_vm3 = vmor %vm654_vm0, %vm655_vm1  ;;  %v643_v10 = vsel %vm638_vm2, %v639_v5, %v1150_v6 }
 0x124   : > { %v651_v3 = vsub.f32 1.0, %v650_v1  ;;  %v644_v14 = vadd.f32 1e-06, %v643_v10 }
 0x126   : > { %v652_v7 = vmul.f32 %v1148_v0, %v651_v3 }
 0x128   : > { %v653_v9 = vadd.f32 %v1148_v0, %v652_v7 }
 0x12a   : > { %v657_v11 = vsel %vm656_vm3, %v1148_v0, %v653_v9 }
 0x12b   : > { %v662_v13 = vsel %vm659_vm4, %v661_v8, %v657_v11 }
 0x12c   : > { %v664_v15 = vmax.f32 %v662_v13, 1e-06 }
 0x12e   : > { %v665_v16 = vmin.f32 %v664_v15, 0.999999 }
 0x130   : > { %v669_v17 = vsel %vm668_vm5, %v644_v14, %v665_v16 }
 0x131   : > { %670 = vst [vmem:[%s1650_s29] sm:$0xff] %v669_v17 }
 0x132 PF: > { %s1801_s11 = sld [smem:[#allocation14_spill]]  ;;  %s686_s9 = sshll.u32 %s1650_s29, 4  ;;  %s687_s9 = int_to_ptr.vmem [resolvable:$true] %s686_s9 }
 0x133   : > { %s1802_s23 = sld [smem:[#allocation22_spill]]  ;;  %s672_s7 = scalar_lea.sflag [#allocation4], %s1637_s15 }
 0x138   : > { %s967_s4 = sshll.u32 %s1801_s11, 3 }
 0x139   : > { %s1803_s5 = smov %s1802_s23  ;;  %s684_s18 = scalar_lea.hbm %s1802_s23, %s967_s4 }
 0x13a   : > { %s688_s10 = sshll.u32 %s684_s18, 4  ;;  %s1261_s11 = scalar_lea.hbm %s1803_s5, 16  ;;  %s689_s10 = int_to_ptr.hbm [resolvable:$true] %s688_s10 }
 0x13b   : > { %s1255_s27 = sshra.s32 %s689_s10, 4  ;;  %s1256_s27 = int_to_ptr.hbm [resolvable:$true] %s1255_s27 }
 0x13c   : > { %s1257_s26 = scalar_lea.hbm %s1256_s27, 8  ;;  %p1262_p11 = scmp.lt.s32.totalorder %s1256_s27, %s1803_s5 }
 0x13d   : > { %p1258_p6 = scmp.ne.s32.totalorder %s1256_s27, %s1257_s26  ;;  %p1263_p1 = scmp.lt.s32.totalorder %s1261_s11, %s1257_s26 }
 0x13f   : > { %p1259_p9 = pnand %p1258_p6, %p1605_p2  ;;  %p1264_p3 = por %p1263_p1, %p1262_p11 }
 0x141   : > { %p1260_p10 = pneg %p1259_p9 }
 0x143   : > { %p1265_p13 = pnand %p1264_p3, %p1260_p10 }
 0x145   : > { %1268 = shalt.err (!%p1265_p13)
}
 0x146   : > { %1010 = dma.vmem_to_hbm [thread:$0]  (%p1605_p2), %s687_s9, 128, %s689_s10, %s672_s7  }
 0x147 PF: > { %p1027_p7 = scmp.ge.s32.totalorder %s1395_s25, 2  ;;  %s700_s15 = sand.u32 1, %s1343_s12  }
 0x148   : > { %s701_s29 = scalar_lea.sflag [#allocation4], %s700_s15 }
 0x149   : > { %p1023_p12 = pnand %p1027_p7, %p1609_p0 }
 0x14b   : > { %p1024_p4 = pneg %p1023_p12 }
 0x14d   : > { %1338 = dma.done.wait (%p1024_p4), %s701_s29, 128  }
 0x14e   : > { %1340 = vsyncadd (%p1024_p4), %s701_s29, 4294967168  ;;  %s22_s25 = sadd.s32 1, %s1395_s25   ;;  %s1805_s2 = sld [smem:[#allocation18_spill]] }
 0x14f   : > { %p1720_p8 = scmp.ge.s32.totalorder %s22_s25, 6   ;;  %s1806_s21 = sld [smem:[#allocation15_spill]] }
 0x150   : > { %s1807_s23 = sld [smem:[#allocation16_spill]]  ;;  %s1809_s12 = smov %s1347_s13 }
 0x151   : > { %s1808_s30 = sld [smem:[#allocation17_spill]]  ;;  %s1810_s13 = smov %s1351_s14 }
 0x152   : > { %s1811_s14 = smov %s1585_s1  ;;  %s1812_s15 = smov %s1359_s16 }
 0x153   : > { %s1813_s16 = smov %s1363_s17  ;;  %s1814_s17 = smov %s1569_s3 }
 0x154   : > { %s1815_s18 = smov %s1371_s19  ;;  %s1816_s19 = smov %s1375_s20 }
 0x155   : > { %s1817_s20 = smov %s1805_s2  ;;  %s1818_s22 = smov %s1391_s24 }
 0x156   :  { %21 = sbr.rel (!%p1720_p8) target bundleno = 17 (0x11), region = 109 }
 0x157   : > { %s1819_s24 = smov %s1808_s30 }
 0x15b   :  { %707 = vsyncpa [#allocation3], 1 }
 0x15c   :  { %709 = vsyncpa [#allocation3 + $0x1], 1 }
 0x15d   :  { %710 = vsyncpa [#allocation6], 1 }
 0x15e   :  { %712 = vsyncpa [#allocation6 + $0x1], 1 }
 0x15f   :  { %713 = vsyncpa [#allocation4], 1 }
 0x160   :  { %715 = vsyncpa [#allocation4 + $0x1], 1 }

</bundles_post_ra>
